<compile_context>
chip_gen: v7x
topology: tpu7x:2x2x1
jax: 0.10.0
libtpu: 0.0.40
codegen_flags: <defaults>
</compile_context>

<pallas_src>
import jax
import jax.numpy as jnp
from jax import lax
from jax.experimental import pallas as pl
from jax.experimental.pallas import tpu as pltpu

# ---- problem constants (from the module definition) ------------------------
CIN = 64
COUT = 128
KH = KW = 3
STRIDE = 2
PAD = 1
K128 = 2 * CIN  # contraction width per dh-slab: (dw, c) packed = 128


def _conv_s2d_kernel(xm_ref, xh_ref, w_ref, b_ref, o_ref):
    """3x3 stride-2 conv on a (dh | dw,c)-packed padded input.

    xm_ref: (th, 2, wq, 128) bf16  main window, s2d rows [t*th, t*th+th);
                                   dim 1 = dh, last dim = dw*64 + c
    xh_ref: (1, 2, wq, 128)  bf16  1-row halo, s2d row t*th + th
    w_ref : (6, 128, 128)    bf16  tap weights, index = 4*dp + 2*dh + dq
                                   (dp=1, dh=1 taps are identically zero -> dropped)
    b_ref : (1, 128)         f32   bias
    o_ref : (th, wo, 128)          output rows [t*th, t*th+th) in NHWC layout

    MXU work: 4 slab matmuls (dp=0) + 2 slab matmuls (dp=1 main rows)
    + 2 small halo matmuls, all K=128, N=128, f32 accumulation.
    """
    th, wo, _ = o_ref.shape
    wq = xm_ref.shape[2]
    f32 = jnp.float32

    # dh-slabs of the main block; wq is a multiple of 8 so these reshapes are
    # tile-aligned (no relayout copies).
    s0 = xm_ref[:, 0, :, :].reshape(th * wq, K128)   # dh = 0 rows
    s1 = xm_ref[:, 1, :, :].reshape(th * wq, K128)   # dh = 1 rows
    h0 = xh_ref[0, 0, :, :]                          # halo row, dh = 0 (wq, 128)

    # ---- dp = 0 taps (kh = 0, 1): output row r <- s2d row r -----------------
    a0 = jnp.dot(s0, w_ref[0], preferred_element_type=f32)     # (dh=0, dq=0)
    a0 = a0 + jnp.dot(s1, w_ref[2], preferred_element_type=f32)  # (dh=1, dq=0)
    a1 = jnp.dot(s0, w_ref[1], preferred_element_type=f32)     # (dh=0, dq=1)
    a1 = a1 + jnp.dot(s1, w_ref[3], preferred_element_type=f32)  # (dh=1, dq=1)
    a0 = a0.reshape(th, wq, COUT)
    a1 = a1.reshape(th, wq, COUT)
    acc = a0[:, :wo, :] + a1[:, 1:wo + 1, :]         # dq column-shifted combine

    # bias added exactly once, after the dp=0 accumulation chain
    o_ref[...] = (acc + b_ref[...]).astype(o_ref.dtype)

    # ---- dp = 1 taps (kh = 2): output row r <- s2d row r+1 -------------------
    # (kh = 3 taps are zero and were dropped from w_ref.)  Rows 1..th-1 come
    # from the main block, row th from the halo; accumulate into disjoint
    # o_ref row slices instead of concatenating inputs.
    if th > 1:
        b0 = jnp.dot(s0, w_ref[4], preferred_element_type=f32).reshape(th, wq, COUT)
        b1 = jnp.dot(s0, w_ref[5], preferred_element_type=f32).reshape(th, wq, COUT)
        bc = b0[:, :wo, :] + b1[:, 1:wo + 1, :]      # per s2d row p -> out row p-1
        o_ref[0:th - 1] += bc[1:th].astype(o_ref.dtype)
    c0 = jnp.dot(h0, w_ref[4], preferred_element_type=f32)
    c1 = jnp.dot(h0, w_ref[5], preferred_element_type=f32)
    cc = c0[:wo, :] + c1[1:wo + 1, :]                # (wo, 128)
    o_ref[th - 1:th] += cc[None, :, :].astype(o_ref.dtype)


def _pick_row_tile(ho, wo, batch, target_m=2048):
    """Largest divisor th of ho with th*wo <= target_m output pixels per step.

    target_m ~ 2048 gives a main-input DMA of >= ~0.5 MB for realistic widths
    and a per-step VMEM footprint well under 32 MiB (fits v5e/v6e/v7x).
    If batch == 1, prefer >= 2 row-tiles so both v7x TensorCores get work.
    """
    divisors = [t for t in range(1, ho + 1) if ho % t == 0]
    fits = [t for t in divisors if t * wo <= max(target_m, wo)]
    th = max(fits)
    if batch < 2 and ho // th < 2:
        half = [t for t in fits if ho // t >= 2]
        if half:
            th = max(half)
    return th


def transition2_forward(x_nchw, weight_oihw, bias):
    """Equivalent of Transition2.forward (Conv2d 64->128, k=3, s=2, p=1).

    x_nchw:      (N, 64, H, W)  float32
    weight_oihw: (128, 64, 3, 3)
    bias:        (128,)
    returns:     (N, 128, H_out, W_out) in NCHW, matching PyTorch.
    """
    n, cin, h, w = x_nchw.shape
    assert cin == CIN
    ho = (h + 2 * PAD - KH) // STRIDE + 1
    wo = (w + 2 * PAD - KW) // STRIDE + 1
    hq = ho + 1                        # s2d rows incl. the 1-row bottom halo
    wq = -(-(wo + 1) // 8) * 8         # s2d cols, rounded to a sublane multiple

    # ---- input glue: ONE pass NCHW f32 -> padded NHWC bf16 -------------------
    x_nhwc = jnp.transpose(x_nchw, (0, 2, 3, 1)).astype(jnp.bfloat16)
    pad_b = 2 * hq - h - PAD
    pad_r = 2 * wq - w - PAD
    x_pad = jnp.pad(x_nhwc, ((0, 0), (PAD, pad_b), (PAD, pad_r), (0, 0)))
    # layout-free (row-major) reshape: (N, 2hq, 2wq, 64) -> (N, hq, 2, wq, 128);
    # dim 2 is dh, last dim is (dw, c) packed.  No extra HBM pass.
    xs = x_pad.reshape(n, hq, 2, wq, K128)
    # TODO(synk): the transpose+cast+pad above is still one bf16 HBM pass of
    # the input; folding it into the kernel needs an in-kernel NCHW->NHWC
    # transpose plus boundary masking, omitted here.

    # ---- weights: OIHW -> 6 taps of (128, 128); K order = (dw, c) ------------
    w_t = jnp.transpose(weight_oihw, (2, 3, 1, 0))               # (3,3,64,128)
    w_t = jnp.pad(w_t, ((0, 1), (0, 1), (0, 0), (0, 0)))         # (4,4,64,128)
    w_t = w_t.reshape(2, 2, 2, 2, CIN, COUT)                     # (dp,dh,dq,dw,c,o)
    w_t = w_t.reshape(8, K128, COUT)[:6].astype(jnp.bfloat16)    # drop kh=3 taps
    b_2d = bias.reshape(1, COUT).astype(jnp.float32)

    th = _pick_row_tile(ho, wo, n)
    nt = ho // th

    out_nhwc = pl.pallas_call(
        _conv_s2d_kernel,
        out_shape=jax.ShapeDtypeStruct((n, ho, wo, COUT), x_nchw.dtype),
        grid=(n, nt),
        in_specs=[
            # main window: th s2d rows
            pl.BlockSpec((None, th, 2, wq, K128), lambda b, t: (b, t, 0, 0, 0)),
            # 1-row halo: s2d row t*th + th (always in bounds since hq = ho + 1)
            pl.BlockSpec((None, 1, 2, wq, K128),
                         lambda b, t: (b, t * th + th, 0, 0, 0)),
            pl.BlockSpec((6, K128, COUT), lambda b, t: (0, 0, 0)),
            pl.BlockSpec((1, COUT), lambda b, t: (0, 0)),
        ],
        out_specs=pl.BlockSpec((None, th, wo, COUT), lambda b, t: (b, t, 0, 0)),
        compiler_params=pltpu.CompilerParams(
            dimension_semantics=("parallel", "parallel"),
            vmem_limit_bytes=32 * 1024 * 1024,
        ),
    )(xs, xs, w_t, b_2d)

    # TODO(synk): downstream HRNet consumers could take NHWC directly and skip
    # this f32 transpose pass; NCHW is kept to match the PyTorch contract.
    return jnp.transpose(out_nhwc, (0, 3, 1, 2))


def _init_params(key):
    """Deterministic init mimicking nn.Conv2d default (uniform +-1/sqrt(fan_in))."""
    k_w, k_b = jax.random.split(key)
    fan_in = CIN * KH * KW
    bound = 1.0 / jnp.sqrt(float(fan_in))
    weight = jax.random.uniform(k_w, (COUT, CIN, KH, KW), jnp.float32, -bound, bound)
    bias = jax.random.uniform(k_b, (COUT,), jnp.float32, -bound, bound)
    return weight, bias


if __name__ == "__main__":
    key = jax.random.PRNGKey(0)
    k_x, k_p = jax.random.split(key)

    # small but module-consistent shapes: in_channels must be 64
    N, H, W = 2, 16, 16
    x = jax.random.normal(k_x, (N, CIN, H, W), jnp.float32)
    weight, bias = _init_params(k_p)

    out = jax.block_until_ready(transition2_forward(x, weight, bias))

    # reference with matching bf16 operands / f32 accumulation
    ref_bf = lax.conv_general_dilated(
        x.astype(jnp.bfloat16), weight.astype(jnp.bfloat16),
        window_strides=(STRIDE, STRIDE), padding=((PAD, PAD), (PAD, PAD)),
        dimension_numbers=("NCHW", "OIHW", "NCHW"),
        preferred_element_type=jnp.float32,
    ) + bias.reshape(1, COUT, 1, 1)
    # full-f32 reference: looser tolerance absorbs bf16 operand rounding
    ref_f32 = lax.conv_general_dilated(
        x, weight, window_strides=(STRIDE, STRIDE),
        padding=((PAD, PAD), (PAD, PAD)),
        dimension_numbers=("NCHW", "OIHW", "NCHW"),
    ) + bias.reshape(1, COUT, 1, 1)

    assert out.shape == (N, COUT, H // 2, W // 2), out.shape
    assert jnp.allclose(out, ref_bf, atol=5e-3, rtol=5e-3), \
        float(jnp.max(jnp.abs(out - ref_bf)))
    assert jnp.allclose(out, ref_f32, atol=5e-2, rtol=5e-2), \
        float(jnp.max(jnp.abs(out - ref_f32)))

    print("KERNEL_OK")
</pallas_src>

<mosaic_0001>
module attributes {stable_mosaic.version = 11 : i64} {
  func.func @_conv_s2d_kernel(%arg0: i32, %arg1: i32, %arg2: memref<1x8x2x16x128xbf16, #tpu.memory_space<vmem>>, %arg3: memref<1x1x2x16x128xbf16, #tpu.memory_space<vmem>>, %arg4: memref<6x128x128xbf16, #tpu.memory_space<vmem>>, %arg5: memref<1x128xf32, #tpu.memory_space<vmem>>, %arg6: memref<1x8x8x128xf32, #tpu.memory_space<vmem>>) attributes {dimension_semantics = [#tpu.dimension_semantics<parallel>, #tpu.dimension_semantics<parallel>], iteration_bounds = array<i64: 2, 1>, scalar_prefetch = 0 : i64, scratch_operands = 0 : i64, tpu.core_type = #tpu.core_type<tc>, window_params = [{transform_indices = @transform_0, window_bounds = array<i64: 1, 8, 2, 16, 128>}, {transform_indices = @transform_1, window_bounds = array<i64: 1, 1, 2, 16, 128>}, {pipeline_mode = #tpu.pipeline_mode<synchronous>, transform_indices = @transform_2, window_bounds = array<i64: 6, 128, 128>}, {pipeline_mode = #tpu.pipeline_mode<synchronous>, transform_indices = @transform_3, window_bounds = array<i64: 1, 128>}, {transform_indices = @transform_4, window_bounds = array<i64: 1, 8, 8, 128>}]} {
    %c0 = arith.constant 0 : index
    %c0_0 = arith.constant 0 : index
    %c0_1 = arith.constant 0 : index
    %c0_2 = arith.constant 0 : index
    %c0_3 = arith.constant 0 : index
    %0 = vector.load %arg2[%c0, %c0_0, %c0_1, %c0_2, %c0_3] : memref<1x8x2x16x128xbf16, #tpu.memory_space<vmem>>, vector<1x8x1x16x128xbf16>
    %1 = vector.shape_cast %0 : vector<1x8x1x16x128xbf16> to vector<8x16x128xbf16>
    %2 = vector.shape_cast %1 : vector<8x16x128xbf16> to vector<128x128xbf16>
    %c0_4 = arith.constant 0 : index
    %c0_5 = arith.constant 0 : index
    %c1 = arith.constant 1 : index
    %c0_6 = arith.constant 0 : index
    %c0_7 = arith.constant 0 : index
    %3 = vector.load %arg2[%c0_4, %c0_5, %c1, %c0_6, %c0_7] : memref<1x8x2x16x128xbf16, #tpu.memory_space<vmem>>, vector<1x8x1x16x128xbf16>
    %4 = vector.shape_cast %3 : vector<1x8x1x16x128xbf16> to vector<8x16x128xbf16>
    %5 = vector.shape_cast %4 : vector<8x16x128xbf16> to vector<128x128xbf16>
    %c0_8 = arith.constant 0 : index
    %c0_9 = arith.constant 0 : index
    %c0_10 = arith.constant 0 : index
    %c0_11 = arith.constant 0 : index
    %c0_12 = arith.constant 0 : index
    %6 = vector.load %arg3[%c0_8, %c0_9, %c0_10, %c0_11, %c0_12] : memref<1x1x2x16x128xbf16, #tpu.memory_space<vmem>>, vector<1x1x1x16x128xbf16>
    %7 = vector.shape_cast %6 : vector<1x1x1x16x128xbf16> to vector<16x128xbf16>
    %c0_13 = arith.constant 0 : index
    %c0_14 = arith.constant 0 : index
    %c0_15 = arith.constant 0 : index
    %8 = vector.load %arg4[%c0_13, %c0_14, %c0_15] : memref<6x128x128xbf16, #tpu.memory_space<vmem>>, vector<1x128x128xbf16>
    %9 = vector.shape_cast %8 : vector<1x128x128xbf16> to vector<128x128xbf16>
    %cst = arith.constant dense<0.000000e+00> : vector<128x128xf32>
    %10 = tpu.matmul %2, %9, %cst {dimension_numbers = #tpu.dot_dimension_numbers<[1], [0], [0], [1], [0, 0, 1, 1], [], []>} : vector<128x128xbf16>, vector<128x128xbf16>, vector<128x128xf32> -> vector<128x128xf32>
    %c2 = arith.constant 2 : index
    %c0_16 = arith.constant 0 : index
    %c0_17 = arith.constant 0 : index
    %11 = vector.load %arg4[%c2, %c0_16, %c0_17] : memref<6x128x128xbf16, #tpu.memory_space<vmem>>, vector<1x128x128xbf16>
    %12 = vector.shape_cast %11 : vector<1x128x128xbf16> to vector<128x128xbf16>
    %cst_18 = arith.constant dense<0.000000e+00> : vector<128x128xf32>
    %13 = tpu.matmul %5, %12, %cst_18 {dimension_numbers = #tpu.dot_dimension_numbers<[1], [0], [0], [1], [0, 0, 1, 1], [], []>} : vector<128x128xbf16>, vector<128x128xbf16>, vector<128x128xf32> -> vector<128x128xf32>
    %14 = arith.addf %10, %13 : vector<128x128xf32>
    %c1_19 = arith.constant 1 : index
    %c0_20 = arith.constant 0 : index
    %c0_21 = arith.constant 0 : index
    %15 = vector.load %arg4[%c1_19, %c0_20, %c0_21] : memref<6x128x128xbf16, #tpu.memory_space<vmem>>, vector<1x128x128xbf16>
    %16 = vector.shape_cast %15 : vector<1x128x128xbf16> to vector<128x128xbf16>
    %cst_22 = arith.constant dense<0.000000e+00> : vector<128x128xf32>
    %17 = tpu.matmul %2, %16, %cst_22 {dimension_numbers = #tpu.dot_dimension_numbers<[1], [0], [0], [1], [0, 0, 1, 1], [], []>} : vector<128x128xbf16>, vector<128x128xbf16>, vector<128x128xf32> -> vector<128x128xf32>
    %c3 = arith.constant 3 : index
    %c0_23 = arith.constant 0 : index
    %c0_24 = arith.constant 0 : index
    %18 = vector.load %arg4[%c3, %c0_23, %c0_24] : memref<6x128x128xbf16, #tpu.memory_space<vmem>>, vector<1x128x128xbf16>
    %19 = vector.shape_cast %18 : vector<1x128x128xbf16> to vector<128x128xbf16>
    %cst_25 = arith.constant dense<0.000000e+00> : vector<128x128xf32>
    %20 = tpu.matmul %5, %19, %cst_25 {dimension_numbers = #tpu.dot_dimension_numbers<[1], [0], [0], [1], [0, 0, 1, 1], [], []>} : vector<128x128xbf16>, vector<128x128xbf16>, vector<128x128xf32> -> vector<128x128xf32>
    %21 = arith.addf %17, %20 : vector<128x128xf32>
    %22 = vector.shape_cast %14 : vector<128x128xf32> to vector<8x16x128xf32>
    %23 = vector.shape_cast %21 : vector<128x128xf32> to vector<8x16x128xf32>
    %24 = vector.extract_strided_slice %22 {offsets = [0, 0, 0], sizes = [8, 8, 128], strides = [1, 1, 1]} : vector<8x16x128xf32> to vector<8x8x128xf32>
    %25 = vector.extract_strided_slice %23 {offsets = [0, 1, 0], sizes = [8, 8, 128], strides = [1, 1, 1]} : vector<8x16x128xf32> to vector<8x8x128xf32>
    %26 = arith.addf %24, %25 : vector<8x8x128xf32>
    %c0_26 = arith.constant 0 : index
    %c0_27 = arith.constant 0 : index
    %27 = vector.load %arg5[%c0_26, %c0_27] : memref<1x128xf32, #tpu.memory_space<vmem>>, vector<1x128xf32>
    %28 = vector.shape_cast %27 : vector<1x128xf32> to vector<1x1x128xf32>
    %29 = vector.broadcast %28 : vector<1x1x128xf32> to vector<8x8x128xf32>
    %30 = arith.addf %26, %29 : vector<8x8x128xf32>
    %c0_28 = arith.constant 0 : index
    %c0_29 = arith.constant 0 : index
    %c0_30 = arith.constant 0 : index
    %c0_31 = arith.constant 0 : index
    %31 = vector.load %arg6[%c0_28, %c0_29, %c0_30, %c0_31] : memref<1x8x8x128xf32, #tpu.memory_space<vmem>>, vector<1x8x8x128xf32>
    %32 = vector.shape_cast %31 : vector<1x8x8x128xf32> to vector<8x8x128xf32>
    %33 = vector.shape_cast %30 : vector<8x8x128xf32> to vector<1x8x8x128xf32>
    tpu.vector_store %arg6[%c0_28, %c0_29, %c0_30, %c0_31], %33 {strides = array<i32>} : memref<1x8x8x128xf32, #tpu.memory_space<vmem>>, vector<1x8x8x128xf32>,
    %c4 = arith.constant 4 : index
    %c0_32 = arith.constant 0 : index
    %c0_33 = arith.constant 0 : index
    %34 = vector.load %arg4[%c4, %c0_32, %c0_33] : memref<6x128x128xbf16, #tpu.memory_space<vmem>>, vector<1x128x128xbf16>
    %35 = vector.shape_cast %34 : vector<1x128x128xbf16> to vector<128x128xbf16>
    %cst_34 = arith.constant dense<0.000000e+00> : vector<128x128xf32>
    %36 = tpu.matmul %2, %35, %cst_34 {dimension_numbers = #tpu.dot_dimension_numbers<[1], [0], [0], [1], [0, 0, 1, 1], [], []>} : vector<128x128xbf16>, vector<128x128xbf16>, vector<128x128xf32> -> vector<128x128xf32>
    %37 = vector.shape_cast %36 : vector<128x128xf32> to vector<8x16x128xf32>
    %c5 = arith.constant 5 : index
    %c0_35 = arith.constant 0 : index
    %c0_36 = arith.constant 0 : index
    %38 = vector.load %arg4[%c5, %c0_35, %c0_36] : memref<6x128x128xbf16, #tpu.memory_space<vmem>>, vector<1x128x128xbf16>
    %39 = vector.shape_cast %38 : vector<1x128x128xbf16> to vector<128x128xbf16>
    %cst_37 = arith.constant dense<0.000000e+00> : vector<128x128xf32>
    %40 = tpu.matmul %2, %39, %cst_37 {dimension_numbers = #tpu.dot_dimension_numbers<[1], [0], [0], [1], [0, 0, 1, 1], [], []>} : vector<128x128xbf16>, vector<128x128xbf16>, vector<128x128xf32> -> vector<128x128xf32>
    %41 = vector.shape_cast %40 : vector<128x128xf32> to vector<8x16x128xf32>
    %42 = vector.extract_strided_slice %37 {offsets = [0, 0, 0], sizes = [8, 8, 128], strides = [1, 1, 1]} : vector<8x16x128xf32> to vector<8x8x128xf32>
    %43 = vector.extract_strided_slice %41 {offsets = [0, 1, 0], sizes = [8, 8, 128], strides = [1, 1, 1]} : vector<8x16x128xf32> to vector<8x8x128xf32>
    %44 = arith.addf %42, %43 : vector<8x8x128xf32>
    %c0_38 = arith.constant 0 : index
    %c0_39 = arith.constant 0 : index
    %c0_40 = arith.constant 0 : index
    %c0_41 = arith.constant 0 : index
    %45 = vector.load %arg6[%c0_38, %c0_39, %c0_40, %c0_41] : memref<1x8x8x128xf32, #tpu.memory_space<vmem>>, vector<1x7x8x128xf32>
    %46 = vector.shape_cast %45 : vector<1x7x8x128xf32> to vector<7x8x128xf32>
    %47 = vector.extract_strided_slice %44 {offsets = [1, 0, 0], sizes = [7, 8, 128], strides = [1, 1, 1]} : vector<8x8x128xf32> to vector<7x8x128xf32>
    %48 = arith.addf %46, %47 : vector<7x8x128xf32>
    %c0_42 = arith.constant 0 : index
    %c0_43 = arith.constant 0 : index
    %c0_44 = arith.constant 0 : index
    %c0_45 = arith.constant 0 : index
    %49 = vector.load %arg6[%c0_42, %c0_43, %c0_44, %c0_45] : memref<1x8x8x128xf32, #tpu.memory_space<vmem>>, vector<1x7x8x128xf32>
    %50 = vector.shape_cast %49 : vector<1x7x8x128xf32> to vector<7x8x128xf32>
    %51 = vector.shape_cast %48 : vector<7x8x128xf32> to vector<1x7x8x128xf32>
    tpu.vector_store %arg6[%c0_42, %c0_43, %c0_44, %c0_45], %51 {strides = array<i32>} : memref<1x8x8x128xf32, #tpu.memory_space<vmem>>, vector<1x7x8x128xf32>,
    %c4_46 = arith.constant 4 : index
    %c0_47 = arith.constant 0 : index
    %c0_48 = arith.constant 0 : index
    %52 = vector.load %arg4[%c4_46, %c0_47, %c0_48] : memref<6x128x128xbf16, #tpu.memory_space<vmem>>, vector<1x128x128xbf16>
    %53 = vector.shape_cast %52 : vector<1x128x128xbf16> to vector<128x128xbf16>
    %cst_49 = arith.constant dense<0.000000e+00> : vector<16x128xf32>
    %54 = tpu.matmul %7, %53, %cst_49 {dimension_numbers = #tpu.dot_dimension_numbers<[1], [0], [0], [1], [0, 0, 1, 1], [], []>} : vector<16x128xbf16>, vector<128x128xbf16>, vector<16x128xf32> -> vector<16x128xf32>
    %c5_50 = arith.constant 5 : index
    %c0_51 = arith.constant 0 : index
    %c0_52 = arith.constant 0 : index
    %55 = vector.load %arg4[%c5_50, %c0_51, %c0_52] : memref<6x128x128xbf16, #tpu.memory_space<vmem>>, vector<1x128x128xbf16>
    %56 = vector.shape_cast %55 : vector<1x128x128xbf16> to vector<128x128xbf16>
    %cst_53 = arith.constant dense<0.000000e+00> : vector<16x128xf32>
    %57 = tpu.matmul %7, %56, %cst_53 {dimension_numbers = #tpu.dot_dimension_numbers<[1], [0], [0], [1], [0, 0, 1, 1], [], []>} : vector<16x128xbf16>, vector<128x128xbf16>, vector<16x128xf32> -> vector<16x128xf32>
    %58 = vector.extract_strided_slice %54 {offsets = [0, 0], sizes = [8, 128], strides = [1, 1]} : vector<16x128xf32> to vector<8x128xf32>
    %59 = vector.extract_strided_slice %57 {offsets = [1, 0], sizes = [8, 128], strides = [1, 1]} : vector<16x128xf32> to vector<8x128xf32>
    %60 = arith.addf %58, %59 : vector<8x128xf32>
    %c0_54 = arith.constant 0 : index
    %c7 = arith.constant 7 : index
    %c0_55 = arith.constant 0 : index
    %c0_56 = arith.constant 0 : index
    %61 = vector.load %arg6[%c0_54, %c7, %c0_55, %c0_56] : memref<1x8x8x128xf32, #tpu.memory_space<vmem>>, vector<1x1x8x128xf32>
    %62 = vector.shape_cast %61 : vector<1x1x8x128xf32> to vector<1x8x128xf32>
    %63 = vector.shape_cast %60 : vector<8x128xf32> to vector<1x8x128xf32>
    %64 = arith.addf %62, %63 : vector<1x8x128xf32>
    %c0_57 = arith.constant 0 : index
    %c7_58 = arith.constant 7 : index
    %c0_59 = arith.constant 0 : index
    %c0_60 = arith.constant 0 : index
    %65 = vector.load %arg6[%c0_57, %c7_58, %c0_59, %c0_60] : memref<1x8x8x128xf32, #tpu.memory_space<vmem>>, vector<1x1x8x128xf32>
    %66 = vector.shape_cast %65 : vector<1x1x8x128xf32> to vector<1x8x128xf32>
    %67 = vector.shape_cast %64 : vector<1x8x128xf32> to vector<1x1x8x128xf32>
    tpu.vector_store %arg6[%c0_57, %c7_58, %c0_59, %c0_60], %67 {strides = array<i32>} : memref<1x8x8x128xf32, #tpu.memory_space<vmem>>, vector<1x1x8x128xf32>,
    return
  }
  func.func @transform_0(%arg0: i32, %arg1: i32) -> (i32, i32, i32, i32, i32) {
    %c0_i32 = arith.constant 0 : i32
    %c0_i32_0 = arith.constant 0 : i32
    %c0_i32_1 = arith.constant 0 : i32
    %c0_i32_2 = arith.constant 0 : i32
    return %arg0, %arg1, %c0_i32, %c0_i32_0, %c0_i32_1 : i32, i32, i32, i32, i32
  }
  func.func @transform_1(%arg0: i32, %arg1: i32) -> (i32, i32, i32, i32, i32) {
    %c8_i32 = arith.constant 8 : i32
    %0 = arith.muli %arg1, %c8_i32 : i32
    %c8_i32_0 = arith.constant 8 : i32
    %1 = arith.addi %0, %c8_i32_0 : i32
    %c0_i32 = arith.constant 0 : i32
    %c0_i32_1 = arith.constant 0 : i32
    %c0_i32_2 = arith.constant 0 : i32
    %c0_i32_3 = arith.constant 0 : i32
    return %arg0, %1, %c0_i32, %c0_i32_1, %c0_i32_2 : i32, i32, i32, i32, i32
  }
  func.func @transform_2(%arg0: i32, %arg1: i32) -> (i32, i32, i32) {
    %c0_i32 = arith.constant 0 : i32
    %c0_i32_0 = arith.constant 0 : i32
    %c0_i32_1 = arith.constant 0 : i32
    %c0_i32_2 = arith.constant 0 : i32
    return %c0_i32, %c0_i32_0, %c0_i32_1 : i32, i32, i32
  }
  func.func @transform_3(%arg0: i32, %arg1: i32) -> (i32, i32) {
    %c0_i32 = arith.constant 0 : i32
    %c0_i32_0 = arith.constant 0 : i32
    %c0_i32_1 = arith.constant 0 : i32
    return %c0_i32, %c0_i32_0 : i32, i32
  }
  func.func @transform_4(%arg0: i32, %arg1: i32) -> (i32, i32, i32, i32) {
    %c0_i32 = arith.constant 0 : i32
    %c0_i32_0 = arith.constant 0 : i32
    %c0_i32_1 = arith.constant 0 : i32
    return %arg0, %arg1, %c0_i32, %c0_i32_0 : i32, i32, i32, i32
  }
}

</mosaic_0001>

<bundles_post_ra>
// kernel: tpu_custom_call.1
= control target key start
LH: loop header
LB: loop body
LE: loop exit
PB: predicated region body
PF: predicated region fallthrough
CT: control target
= control target key end

     0   :  { %s3219_s0 = inlined_call_operand.hbm [shape: bf16[2,9,2,16,128], index: 0, kind: input, shape index: {}]   ;;  %s3220_s1 = inlined_call_operand.hbm [shape: bf16[2,9,2,16,128], index: 1, kind: input, shape index: {}]   ;;  %s3221_s2 = inlined_call_operand.hbm [shape: bf16[6,128,128], index: 2, kind: input, shape index: {}]   ;;  %s3222_s3 = inlined_call_operand.vmem [shape: f32[1,128], index: 3, kind: input, shape index: {}]   ;;  %s3223_s4 = inlined_call_operand.hbm [shape: f32[2,8,8,128], index: 4, kind: output, shape index: {}]  }
   0x1   :  { %3232 = sst [smem:[#allocation16_spill]] %s3219_s0 }
   0x2   :  { %3233 = sst [smem:[#allocation17_spill]] %s3221_s2 }
   0x3   :  { %9 = vsyncpa [#allocation3], 0 }
   0x4   :  { %11 = vsyncpa [#allocation3 + $0x1], 0 }
   0x5   :  { %12 = vsyncpa [#allocation6], 0 }
   0x6   :  { %14 = vsyncpa [#allocation6 + $0x1], 0 }
   0x7   :  { %15 = vsyncpa [#allocation4], 0 }
   0x8   :  { %17 = vsyncpa [#allocation4 + $0x1], 0  ;;  %s2774_s15 = smov 0   ;;  %s2776_s16 = smov 0  }
   0x9   :  { %s2778_s17 = smov 0   ;;  %s2780_s18 = smov 0  }
   0xa   :  { %s2782_s19 = smov 0   ;;  %s2784_s20 = smov 0  }
   0xb LB: > { %3234 = sst [smem:[#allocation13_spill]] %s2725_s17  ;;  %s2805_s21 = sadd.s32 4294967295, %s2737_s20   ;;  %s2737_s20 = sphi %s2784_s20, %s23_s20   ;;  %s2733_s19 = sphi %s2782_s19, %s3261_s19   ;;  %s2729_s18 = sphi %s2780_s18, %s3260_s18   ;;  %s2725_s17 = sphi %s2778_s17, %s3256_s17   ;;  %s2721_s16 = sphi %s2776_s16, %s3259_s16   ;;  %s2717_s15 = sphi %s2774_s15, %s3258_s15  }
   0xc   : > { %s1911_s22 = sadd.s32 4294967294, %s2737_s20   ;;  %p57_p0 = scmp.ne.s32.totalorder %s2721_s16, %s2717_s15 }
   0xd   : > { %p3224_p1 = scmp.eq.s32.totalorder %s2805_s21, 0  ;;  %p163_p3 = scmp.eq.s32.totalorder %s1911_s22, 1 }
   0xe   : > { %p1912_p5 = scmp.ge.s32.totalorder %s2737_s20, 1  ;;  %p170_p7 = scmp.lt.s32.totalorder %s2737_s20, 3 }
   0xf   : > { %p2814_p4 = por %p3224_p1, %p57_p0  ;;  %p2819_p6 = por %p163_p3, %p57_p0 }
  0x10   : > { %p2824_p8 = pnand %p1912_p5, %p170_p7  ;;  %s2739_s26 = smov [#allocation7]  }
  0x11   : > { %s3235_s23 = scalar_select %p2814_p4, 1, 0 }
  0x12   : > { %s3236_s24 = scalar_select %p2819_p6, 1, 0 }
  0x13   : > { %s3237_s25 = scalar_select %p2824_p8, 1, 0 }
  0x14   : > { %s182_s27 = sshll.u32 %s2739_s26, 4  ;;  %p2403_p9 = pneg %p2824_p8  ;;  %s183_s27 = int_to_ptr.vmem [resolvable:$true] %s182_s27 }
  0x15   : > { %s35_s29 = sadd.s32 1, %s2733_s19  ;;  %s3239_s2 = sld [smem:[#allocation17_spill]] }
  0x16   : > { %p2833_p11 = pnand %p2403_p9, %p3224_p1 }
  0x18   : > { %p2560_p13 = pneg %p2833_p11 }
  0x1b   : > { %s2558_s6 = scalar_lea.hbm %s3239_s2, 6144 }
  0x1c   : > { %p2559_p12 = scmp.ne.s32.totalorder %s3239_s2, %s2558_s6  ;;  %p2565_p5 = scmp.lt.u32.totalorder %s2558_s6, %s3239_s2 }
  0x1e   : > { %p2561_p0 = pnand %p2560_p13, %p2559_p12 }
  0x20   : > { %p2562_p3 = pneg %p2561_p0 }
  0x22   : > { %p2567_p7 = pnand %p2565_p5, %p2562_p3 }
  0x24   : > { %2570 = shalt.err (!%p2567_p7)
}
  0x25   : > { %s2571_s11 = scalar_lea.vmem %s183_s27, 6144  ;;  %p2579_p2 = scmp.lt.s32.totalorder %s183_s27, %s183_s27 }
  0x26   : > { %p2572_p9 = scmp.ne.s32.totalorder %s183_s27, %s2571_s11  ;;  %p2580_p6 = scmp.lt.s32.totalorder %s2571_s11, %s2571_s11 }
  0x28   : > { %p2574_p10 = pnand %p2572_p9, %p2560_p13  ;;  %p2581_p4 = por %p2580_p6, %p2579_p2 }
  0x2a   : > { %p2575_p1 = pneg %p2574_p10 }
  0x2c   : > { %p2582_p8 = pnand %p2581_p4, %p2575_p1 }
  0x2e   : > { %2585 = shalt.err (!%p2582_p8)
}
  0x2f   : > { %s3228_s12 = smov 64   ;;  %s2741_s13 = smov 4  }
  0x30   : > { %2406 = dma.hbm_to_vmem [thread:$0]  (!%p2833_p11), %s3239_s2, 6144, %s183_s27, [#allocation6], %s3228_s12, %s3228_s12, %s2741_s13  }
  0x31   : > { %p37_p1 = scmp.ge.s32.totalorder %s35_s29, 2  ;;  %s44_s26 = sadd.s32 1, %s2725_s17 }
  0x32   : > { %p51_p2 = scmp.ne.s32.totalorder %s2725_s17, %s2721_s16  ;;  %p52_p4 = scmp.eq.s32.totalorder %s2737_s20, 0 }
  0x33   : > { %s3263_s29 = smov (%p37_p1, %s35_s29), 0  ;;  %p3241_p8 = scmp.eq.s32.totalorder %s2805_s21, 1 }
  0x34   : > { %3240 = sst [smem:[#allocation14_spill]] %s3263_s29  ;;  %p53_p6 = por %p52_p4, %p51_p2 }
  0x35   : > { %p2865_p10 = por %p3241_p8, %p51_p2  ;;  %s39_s30 = ssub.s32 %s2733_s19, %s3263_s29 }
  0x36   : > { %p2419_p12 = scmp.lt.s32.totalorder %s2737_s20, 2  ;;  %p42_p13 = scmp.eq.s32.totalorder %s39_s30, 0 }
  0x37   : > { %s2873_s5 = sand.u32 1, %s2725_s17   ;;  %s3227_s7 = smul.u32 2304, %s2733_s19 }
  0x38   : > { %s1915_s27 = sshll.u32 %s2873_s5, 7  ;;  %p2880_p11 = pnand %p2419_p12, %p53_p6 }
  0x39   : > { %s2877_s6 = scalar_select %p42_p13, %s2725_s17, %s44_s26  }
  0x3a   : > { %s203_s8 = scalar_lea.vmem [#allocation2], %s1915_s27  ;;  %s3245_s0 = sld [smem:[#allocation16_spill]] }
  0x3b   : > { %3243 = sst [smem:[#allocation15_spill]] %s2877_s6  ;;  %s222_s9 = sshll.u32 %s203_s8, 4  ;;  %s2891_s9 = int_to_ptr.vmem [resolvable:$true] %s222_s9 }
  0x3c   : > { %s200_s30 = scalar_lea.sflag [#allocation3], %s2873_s5  ;;  %p2588_p3 = pneg %p2880_p11 }
  0x40   : > { %s2889_s22 = scalar_lea.hbm %s3245_s0, %s3227_s7  ;;  %s2591_s14 = scalar_lea.hbm %s3245_s0, 4608 }
  0x41   : > { %s2586_s27 = scalar_lea.hbm %s2889_s22, 2048  ;;  %p2592_p9 = scmp.lt.u32.totalorder %s2889_s22, %s3245_s0 }
  0x42   : > { %p2587_p0 = scmp.ne.s32.totalorder %s2889_s22, %s2586_s27  ;;  %p2593_p1 = scmp.lt.u32.totalorder %s2591_s14, %s2586_s27 }
  0x43   : > { %p2595_p4 = scmp.lt.u32.totalorder %s2586_s27, %s2889_s22 }
  0x44   : > { %p2589_p5 = pnand %p2588_p3, %p2587_p0  ;;  %p2594_p2 = por %p2593_p1, %p2592_p9 }
  0x46   : > { %p2590_p7 = pneg %p2589_p5  ;;  %p2596_p6 = por %p2595_p4, %p2594_p2 }
  0x48   : > { %p2597_p8 = pnand %p2596_p6, %p2590_p7 }
  0x4a   : > { %2600 = shalt.err (!%p2597_p8)
}
  0x4b   : > { %s2601_s26 = scalar_lea.vmem %s2891_s9, 2048  ;;  %s2742_s8 = smov [#allocation2]  }
  0x4c   : > { %p2602_p12 = scmp.ne.s32.totalorder %s2891_s9, %s2601_s26  ;;  %s2606_s11 = sshll.u32 %s2742_s8, 4  ;;  %s2607_s11 = int_to_ptr.vmem [resolvable:$false] %s2606_s11 }
  0x4d   : > { %s2608_s12 = scalar_lea.vmem %s2607_s11, 4096  ;;  %p2609_p5 = scmp.lt.s32.totalorder %s2891_s9, %s2607_s11 }
  0x4e   : > { %p2604_p13 = pnand %p2602_p12, %p2588_p3  ;;  %p2610_p9 = scmp.lt.s32.totalorder %s2608_s12, %s2601_s26 }
  0x50   : > { %p2605_p0 = pneg %p2604_p13  ;;  %p2611_p1 = por %p2610_p9, %p2609_p5 }
  0x52   : > { %p2612_p2 = pnand %p2611_p1, %p2605_p0 }
  0x54   : > { %2615 = shalt.err (!%p2612_p2)
}
  0x55   : > { %s3246_s7 = smov 64   ;;  %s1917_s27 = sshll.u32 %s2873_s5, 4 }
  0x56   : > { %2410 = dma.hbm_to_vmem [thread:$0]  (!%p2880_p11), %s2889_s22, 2048, %s2891_s9, %s200_s30, %s3246_s7, %s3246_s7, %s2741_s13  }
  0x57   : > { %s3247_s14 = smul.u32 2304, %s2733_s19  ;;  %s236_s0 = scalar_lea.vmem [#allocation5], %s1917_s27 }
  0x58   : > { %s247_s2 = sshll.u32 %s236_s0, 4  ;;  %s3248_s29 = sand.u32 1, %s2737_s20   ;;  %s2933_s2 = int_to_ptr.vmem [resolvable:$true] %s247_s2 }
  0x59   : > { %s1832_s11 = scalar_lea.hbm %s3220_s1, %s3247_s14  ;;  %s2937_s6 = scalar_lea.sflag [#allocation6], %s3248_s29 }
  0x5a   : > { %s2931_s12 = scalar_lea.hbm %s1832_s11, 2048  ;;  %s2646_s17 = scalar_lea.hbm %s1832_s11, 2304 }
  0x5b   : > { %p2617_p7 = scmp.ne.s32.totalorder %s2931_s12, %s2646_s17  ;;  %s2621_s22 = scalar_lea.hbm %s3220_s1, 4608 }
  0x5c   : > { %p2622_p8 = scmp.lt.u32.totalorder %s2931_s12, %s3220_s1  ;;  %p2623_p12 = scmp.lt.u32.totalorder %s2621_s22, %s2646_s17 }
  0x5d   : > { %p2619_p4 = pnand %p2617_p7, %p2588_p3  ;;  %p2625_p0 = scmp.lt.u32.totalorder %s2646_s17, %s2931_s12 }
  0x5e   : > { %p2624_p13 = por %p2623_p12, %p2622_p8 }
  0x5f   : > { %p2620_p6 = pneg %p2619_p4 }
  0x60   : > { %p2626_p5 = por %p2625_p0, %p2624_p13 }
  0x62   : > { %p2627_p9 = pnand %p2626_p5, %p2620_p6 }
  0x64   : > { %2630 = shalt.err (!%p2627_p9)
}
  0x65   : > { %s2631_s0 = scalar_lea.vmem %s2933_s2, 256  ;;  %s2743_s29 = smov [#allocation5]  }
  0x66   : > { %p2632_p1 = scmp.ne.s32.totalorder %s2933_s2, %s2631_s0  ;;  %s2636_s27 = sshll.u32 %s2743_s29, 4  ;;  %s2637_s27 = int_to_ptr.vmem [resolvable:$false] %s2636_s27 }
  0x67   : > { %s2638_s26 = scalar_lea.vmem %s2637_s27, 512  ;;  %p2639_p4 = scmp.lt.s32.totalorder %s2933_s2, %s2637_s27 }
  0x68   : > { %p2634_p2 = pnand %p2632_p1, %p2588_p3  ;;  %p2640_p8 = scmp.lt.s32.totalorder %s2638_s26, %s2631_s0 }
  0x6a   : > { %p2635_p7 = pneg %p2634_p2  ;;  %p2641_p12 = por %p2640_p8, %p2639_p4 }
  0x6c   : > { %p2642_p13 = pnand %p2641_p12, %p2635_p7 }
  0x6e   : > { %2645 = shalt.err (!%p2642_p13)
}
  0x6f   : > { %2413 = dma.hbm_to_vmem [thread:$0]  (!%p2880_p11), %s2931_s12, 256, %s2933_s2, %s2937_s6, %s3246_s7, %s3246_s7, %s2741_s13  }
  0x70   : > { %p3249_p3 = scmp.ne.s32.totalorder %s3237_s25, 0 }
  0x71   : > { %s2968_s17 = sand.u32 (!%p3249_p3), 1, %s2721_s16   ;;  %p3250_p6 = scmp.ne.s32.totalorder (!%p3249_p3), %s3235_s23, 0 }
  0x72   : > { %259 = sbr.rel (%p3249_p3) target bundleno = 494 (0x1ee), region = 36  ;;  %s1920_s8 = sshll.u32 (!%p3249_p3), %s2968_s17, 7 }
  0x73   : > { %s262_s11 = scalar_lea.sflag (!%p3249_p3), [#allocation3], %s2968_s17  ;;  %s2972_s5 = scalar_lea.vmem (!%p3249_p3), [#allocation2], %s1920_s8 }
  0x79   : > { %2700 = dma.done.wait (%p3250_p6), %s262_s11, 2048  }
  0x7a   : > { %2702 = vsyncadd (%p3250_p6), %s262_s11, 4294965248  ;;  %s270_s2 = sand.u32 1, %s2805_s21   ;;  %s1921_s25 = sshll.u32 %s2968_s17, 4 }
  0x7b   : > { %s271_s13 = scalar_lea.sflag [#allocation6], %s270_s2  ;;  %s2980_s6 = scalar_lea.vmem [#allocation5], %s1921_s25 }
  0x7c   : > { %2704 = dma.done.wait (%p3250_p6), %s271_s13, 256  }
  0x7d   : > { %2706 = vsyncadd (%p3250_p6), %s271_s13, 4294967040  ;;  %p3251_p11 = scmp.eq.s32.totalorder %s2805_s21, 0 }
  0x7f   : > { %2708 = dma.done.wait (%p3251_p11), [#allocation6], 6144   ;;  %p3252_p0 = pmov %p3251_p11 }
  0x80   : > { %v2477_v0 = vld [vmem:[#allocation7 + $0x80] sm:$0xff]   ;;  %v2479_v2 = vld [vmem:[#allocation7 + $0x88] sm:$0xff]   ;;  %v2481_v4 = vld [vmem:[#allocation7 + $0x90] sm:$0xff]   ;;  %vm2745_vm0 = vmmov 0   ;;  %vm1097_vm1 = vcmask 1046528   ;;  %s1923_s10 = sshll.u32 %s2968_s17, 6 }
  0x81   : > { %2710 = vsyncadd (%p3252_p0), [#allocation6], 4294961152  ;;  %v2478_v1 = vld [vmem:[#allocation7] sm:$0xff]   ;;  %2144 = vmatprep.subr.bf16.mxu0 %v2477_v0  ;;  %v2480_v3 = vld [vmem:[#allocation7 + $0x8] sm:$0xff]   ;;  %s3123_s7 = scalar_lea.vmem [#allocation8], %s1923_s10  ;;  %s2029_s12 = sshll.u32 %s2729_s18, 10 }
  0x82   : > { %2176 = vmatprep.subr.bf16.mxu1 %v2478_v1  ;;  %2145 = vmatpush3.bf16.msra.mxu0 %v2477_v0  ;;  %v2482_v5 = vld [vmem:[#allocation7 + $0x10] sm:$0xff]   ;;  %v2483_v6 = vld [vmem:[#allocation7 + $0x98] sm:$0xff]   ;;  %v2485_v8 = vld [vmem:[#allocation7 + $0xa0] sm:$0xff]   ;;  %s1786_s9 = sshll.u32 %s3123_s7, 4  ;;  %s3167_s14 = scalar_lea.hbm %s3223_s4, %s2029_s12  ;;  %s3169_s9 = int_to_ptr.vmem [resolvable:$true] %s1786_s9 }
  0x83   : > { %2177 = vmatpush3.bf16.msra.mxu1 %v2478_v1  ;;  %2146 = vmatprep.subr.bf16.mxu0 %v2479_v2  ;;  %v2484_v7 = vld [vmem:[#allocation7 + $0x18] sm:$0xff]   ;;  %v2486_v9 = vld [vmem:[#allocation7 + $0x20] sm:$0xff]   ;;  %v2487_v10 = vld [vmem:[#allocation7 + $0xa8] sm:$0xff]   ;;  %v2744_v1 = vmov 0.0   ;;  %s1771_s0 = scalar_lea.sflag [#allocation4], %s2968_s17  ;;  %s2647_s18 = scalar_lea.vmem %s3169_s9, 1024 }
  0x84   : > { %2178 = vmatprep.subr.bf16.mxu1 %v2480_v3  ;;  %v2488_v11 = vld [vmem:[#allocation7 + $0x28] sm:$0xff]   ;;  %v2994_v13 = vld [vmem:[%s2972_s5] sm:$0xff]   ;;  %v2489_v14 = vld [vmem:[#allocation7 + $0xb0] sm:$0xff]   ;;  %p2648_p5 = scmp.ne.s32.totalorder %s3169_s9, %s2647_s18  ;;  %s2746_s29 = smov [#allocation8]  }
  0x85   : > { %v2991_v12 = vld [vmem:[%s2972_s5 + $0x8] sm:$0xff]   ;;  %2192 = vmatprep.mubr.bf16.mxu1 %v2994_v13  ;;  %v2490_v15 = vld [vmem:[#allocation7 + $0x30] sm:$0xff]   ;;  %v2491_v16 = vld [vmem:[#allocation7 + $0xb8] sm:$0xff]   ;;  %s2651_s27 = sshll.u32 %s2746_s29, 4  ;;  %s2652_s27 = int_to_ptr.vmem [resolvable:$false] %s2651_s27 }
  0x86   : > { %2147 = vmatpush3.bf16.msra.mxu0 %v2479_v2  ;;  %2160 = vmatprep.mubr.bf16.mxu0 %v2991_v12  ;;  %v2492_v17 = vld [vmem:[#allocation7 + $0x38] sm:$0xff]   ;;  %v2497_v19 = vld [vmem:[#allocation7 + $0xc0] sm:$0xff]   ;;  %v3002_v21 = vld [vmem:[%s2972_s5 + $0x10] sm:$0xff]   ;;  %p2649_p9 = pnand %p2648_p5, %p2865_p10  ;;  %s2653_s26 = scalar_lea.vmem %s2652_s27, 2048 }
  0x87   : > { %2179 = vmatpush3.bf16.msra.mxu1 %v2480_v3  ;;  %2148 = vmatprep.subr.bf16.mxu0 %v2481_v4  ;;  %v2999_v18 = vld [vmem:[%s2972_s5 + $0x18] sm:$0xff]   ;;  %v2498_v20 = vld [vmem:[#allocation7 + $0x100] sm:$0xff]   ;;  %v2499_v22 = vld [vmem:[#allocation7 + $0xc8] sm:$0xff]   ;;  %p2654_p2 = scmp.lt.s32.totalorder %s3169_s9, %s2652_s27  ;;  %p2655_p7 = scmp.lt.s32.totalorder %s2653_s26, %s2647_s18 }
  0x88   : > { %2180 = vmatprep.subr.bf16.mxu1 %v2482_v5  ;;  %v2500_v23 = vld [vmem:[#allocation7 + $0x108] sm:$0xff]   ;;  %v3009_v25 = vld [vmem:[%s2972_s5 + $0x20] sm:$0xff]   ;;  %v3013_v26 = vld [vmem:[%s2972_s5 + $0x38] sm:$0xff]   ;;  %p2650_p1 = pneg %p2649_p9 }
  0x89   : > { %v3005_v24 = vld [vmem:[%s2972_s5 + $0x28] sm:$0xff]   ;;  %v2505_v27 = vld [vmem:[#allocation7 + $0xd0] sm:$0xff]   ;;  %v2507_v30 = vld [vmem:[#allocation7 + $0xd8] sm:$0xff]   ;;  %p2656_p4 = por %p2655_p7, %p2654_p2 }
  0x8a   : > { %2149 = vmatpush3.bf16.msra.mxu0 %v2481_v4  ;;  %v2506_v28 = vld [vmem:[#allocation7 + $0x110] sm:$0xff]   ;;  %v2508_v31 = vld [vmem:[#allocation7 + $0x118] sm:$0xff]   ;;  %v3021_v32 = vld [vmem:[%s2972_s5 + $0x48] sm:$0xff]  }
  0x8b   : > { %2181 = vmatpush3.bf16.msra.mxu1 %v2482_v5  ;;  %2150 = vmatprep.subr.bf16.mxu0 %v2483_v6  ;;  %v3018_v29 = vld [vmem:[%s2972_s5 + $0x30] sm:$0xff]   ;;  %v3025_v33 = vld [vmem:[%s2972_s5 + $0x40] sm:$0xff]   ;;  %v3029_v34 = vld [vmem:[%s2972_s5 + $0x58] sm:$0xff]   ;;  %p2657_p8 = pnand %p2656_p4, %p2650_p1 }
  0x8c   : > { %2182 = vmatprep.subr.bf16.mxu1 %v2484_v7  ;;  %v2513_v35 = vld [vmem:[#allocation7 + $0xe0] sm:$0xff]   ;;  %v3034_v37 = vld [vmem:[%s2972_s5 + $0x50] sm:$0xff]   ;;  %v2515_v38 = vld [vmem:[#allocation7 + $0xe8] sm:$0xff]  }
  0x8d   : > { %v2514_v36 = vld [vmem:[#allocation7 + $0x120] sm:$0xff]   ;;  %v2516_v39 = vld [vmem:[#allocation7 + $0x128] sm:$0xff]   ;;  %v2521_v42 = vld [vmem:[#allocation7 + $0xf0] sm:$0xff]  }
  0x8e   : > { %2151 = vmatpush3.bf16.msra.mxu0 %v2483_v6  ;;  %v3037_v40 = vld [vmem:[%s2972_s5 + $0x68] sm:$0xff]   ;;  %v3041_v41 = vld [vmem:[%s2972_s5 + $0x60] sm:$0xff]   ;;  %v2522_v43 = vld [vmem:[#allocation7 + $0x130] sm:$0xff]  }
  0x8f   : > { %2183 = vmatpush3.bf16.msra.mxu1 %v2484_v7  ;;  %2152 = vmatprep.subr.bf16.mxu0 %v2485_v8  ;;  %v3047_v44 = vld [vmem:[%s2972_s5 + $0x78] sm:$0xff]   ;;  %v3050_v45 = vld [vmem:[%s2972_s5 + $0x70] sm:$0xff]   ;;  %v2525_v48 = vld [vmem:[#allocation7 + $0x40] sm:$0xff]  }
  0x90   : > { %2184 = vmatprep.subr.bf16.mxu1 %v2486_v9  ;;  %v2523_v46 = vld [vmem:[#allocation7 + $0xf8] sm:$0xff]   ;;  %v2526_v49 = vld [vmem:[#allocation7 + $0x140] sm:$0xff]   ;;  %v2527_v50 = vld [vmem:[#allocation7 + $0x48] sm:$0xff]  }
  0x91   : > { %v2524_v47 = vld [vmem:[#allocation7 + $0x138] sm:$0xff]   ;;  %v2528_v51 = vld [vmem:[#allocation7 + $0x148] sm:$0xff]   ;;  %v2529_v52 = vld [vmem:[#allocation7 + $0x50] sm:$0xff]  }
  0x92   : > { %2153 = vmatpush3.bf16.msra.mxu0 %v2485_v8  ;;  %v2530_v53 = vld [vmem:[#allocation7 + $0x150] sm:$0xff]   ;;  %v2531_v54 = vld [vmem:[#allocation7 + $0x58] sm:$0xff]   ;;  %v2533_v56 = vld [vmem:[#allocation7 + $0x60] sm:$0xff]  }
  0x93   : > { %2185 = vmatpush3.bf16.msra.mxu1 %v2486_v9  ;;  %2154 = vmatprep.subr.bf16.mxu0 %v2487_v10  ;;  %v2532_v55 = vld [vmem:[#allocation7 + $0x158] sm:$0xff]   ;;  %v2534_v57 = vld [vmem:[#allocation7 + $0x160] sm:$0xff]   ;;  %v2535_v58 = vld [vmem:[#allocation7 + $0x68] sm:$0xff]  }
  0x94   : > { %2186 = vmatprep.subr.bf16.mxu1 %v2488_v11  ;;  %v2536_v59 = vld [vmem:[#allocation7 + $0x168] sm:$0xff]   ;;  %v2537_v60 = vld [vmem:[#allocation7 + $0x70] sm:$0xff]   ;;  %v2539_v62 = vld [vmem:[#allocation7 + $0x78] sm:$0xff]  }
  0x95   : > { %v2538_v61 = vld [vmem:[#allocation7 + $0x170] sm:$0xff]   ;;  %v2540_v63 = vld [vmem:[#allocation7 + $0x178] sm:$0xff]   ;;  %v2541_v0 = vld [vmem:[#allocation7 + $0x140] sm:$0xff]  }
  0x96   : > { %2155 = vmatpush3.bf16.msra.mxu0 %v2487_v10  ;;  %v2543_v2 = vld [vmem:[#allocation7 + $0x100] sm:$0xff]   ;;  %v2542_v3 = vld [vmem:[#allocation7 + $0x148] sm:$0xff]   ;;  %v2544_v5 = vld [vmem:[#allocation7 + $0x150] sm:$0xff]  }
  0x97   : > { %2187 = vmatpush3.bf16.msra.mxu1 %v2488_v11  ;;  %2156 = vmatprep.subr.bf16.mxu0 %v2489_v14  ;;  %v2545_v4 = vld [vmem:[#allocation7 + $0x108] sm:$0xff]   ;;  %v2547_v6 = vld [vmem:[#allocation7 + $0x110] sm:$0xff]   ;;  %v2546_v7 = vld [vmem:[#allocation7 + $0x158] sm:$0xff]  }
  0x98   : > { %2188 = vmatprep.subr.bf16.mxu1 %v2490_v15  ;;  %v2549_v8 = vld [vmem:[#allocation7 + $0x118] sm:$0xff]   ;;  %v2548_v9 = vld [vmem:[#allocation7 + $0x160] sm:$0xff]   ;;  %v2550_v11 = vld [vmem:[#allocation7 + $0x168] sm:$0xff]  }
  0x99   : > { %v2551_v10 = vld [vmem:[#allocation7 + $0x120] sm:$0xff]  }
  0x9a   : > { %2157 = vmatpush3.bf16.msra.mxu0 %v2489_v14  ;;  %v2555_v14 = vld [vmem:[#allocation7 + $0x130] sm:$0xff]  }
  0x9b   : > { %2189 = vmatpush3.bf16.msra.mxu1 %v2490_v15  ;;  %2158 = vmatprep.subr.bf16.mxu0 %v2491_v16  ;;  %v2554_v15 = vld [vmem:[#allocation7 + $0x178] sm:$0xff]  }
  0x9c   : > { %2190 = vmatprep.subr.bf16.mxu1 %v2492_v17 }
  0x9e   : > { %2159 = vmatpush3.bf16.msra.mxu0 %v2491_v16  ;;  %v2557_v16 = vld [vmem:[#allocation7 + $0x138] sm:$0xff]  }
  0x9f   : > { %2191 = vmatpush3.bf16.msra.mxu1 %v2492_v17  ;;  %2208 = vmatprep.subr.bf16.mxu0 %v2497_v19  ;;  %v2556_v17 = vld [vmem:[%s2980_s6] sm:$0xff]  }
  0xa0   : > { %2272 = vmatprep.subr.bf16.mxu1 %v2498_v20 }
  0xa1   : > { %2161 = vmatmul.mubr.bf16.vlgmr.msra.gmra.mrb[0].mxu0 %v2999_v18 }
  0xa2   : > { %2193 = vmatmul.mubr.bf16.vlgmr.msra.gmra.mrb[0].mxu1 %v3002_v21  ;;  %2209 = vmatpush3.bf16.msra.mxu0 %v2497_v19 }
  0xa3   : > { %2273 = vmatpush3.bf16.msra.mxu1 %v2498_v20  ;;  %2210 = vmatprep.subr.bf16.mxu0 %v2499_v22 }
  0xa4   : > { %2274 = vmatprep.subr.bf16.mxu1 %v2500_v23  ;;  %2164 = vmatprep.mubr.bf16.mxu0 %v3005_v24 }
  0xa5   : > { %2196 = vmatprep.mubr.bf16.mxu1 %v3009_v25 }
  0xa6   : > { %2211 = vmatpush3.bf16.msra.mxu0 %v2499_v22 }
  0xa7   : > { %2275 = vmatpush3.bf16.msra.mxu1 %v2500_v23  ;;  %2212 = vmatprep.subr.bf16.mxu0 %v2505_v27 }
  0xa8   : > { %2276 = vmatprep.subr.bf16.mxu1 %v2506_v28 }
  0xa9   : > { %2165 = vmatmul.mubr.bf16.gmra.mrb[4].mxu0 %v3013_v26 }
  0xaa   : > { %2197 = vmatmul.mubr.bf16.gmra.mrb[4].mxu1 %v3018_v29  ;;  %2213 = vmatpush3.bf16.msra.mxu0 %v2505_v27 }
  0xab   : > { %2277 = vmatpush3.bf16.msra.mxu1 %v2506_v28  ;;  %2214 = vmatprep.subr.bf16.mxu0 %v2507_v30 }
  0xac   : > { %2278 = vmatprep.subr.bf16.mxu1 %v2508_v31  ;;  %2168 = vmatprep.mubr.bf16.mxu0 %v3021_v32 }
  0xad   : > { %2200 = vmatprep.mubr.bf16.mxu1 %v3025_v33 }
  0xae   : > { %2215 = vmatpush3.bf16.msra.mxu0 %v2507_v30 }
  0xaf   : > { %2279 = vmatpush3.bf16.msra.mxu1 %v2508_v31  ;;  %2216 = vmatprep.subr.bf16.mxu0 %v2513_v35 }
  0xb0   : > { %2280 = vmatprep.subr.bf16.mxu1 %v2514_v36 }
  0xb1   : > { %2169 = vmatmul.mubr.bf16.gmra.mrb[8].mxu0 %v3029_v34 }
  0xb2   : > { %2201 = vmatmul.mubr.bf16.gmra.mrb[8].mxu1 %v3034_v37  ;;  %2217 = vmatpush3.bf16.msra.mxu0 %v2513_v35 }
  0xb3   : > { %2281 = vmatpush3.bf16.msra.mxu1 %v2514_v36  ;;  %2218 = vmatprep.subr.bf16.mxu0 %v2515_v38 }
  0xb4   : > { %2282 = vmatprep.subr.bf16.mxu1 %v2516_v39  ;;  %2172 = vmatprep.mubr.bf16.mxu0 %v3037_v40 }
  0xb5   : > { %2204 = vmatprep.mubr.bf16.mxu1 %v3041_v41 }
  0xb6   : > { %2219 = vmatpush3.bf16.msra.mxu0 %v2515_v38 }
  0xb7   : > { %2283 = vmatpush3.bf16.msra.mxu1 %v2516_v39  ;;  %2220 = vmatprep.subr.bf16.mxu0 %v2521_v42 }
  0xb8   : > { %2284 = vmatprep.subr.bf16.mxu1 %v2522_v43 }
  0xb9   : > { %2173 = vmatmul.mubr.bf16.gmra.mrb[12].mxu0 %v3047_v44 }
  0xba   : > { %2205 = vmatmul.mubr.bf16.gmra.mrb[12].mxu1 %v3050_v45  ;;  %2221 = vmatpush3.bf16.msra.mxu0 %v2521_v42 }
  0xbb   : > { %2285 = vmatpush3.bf16.msra.mxu1 %v2522_v43  ;;  %2222 = vmatprep.subr.bf16.mxu0 %v2523_v46 }
  0xbc   : > { %2286 = vmatprep.subr.bf16.mxu1 %v2524_v47  ;;  %2224 = vmatprep.mubr.bf16.mxu0 %v2991_v12  ;;  %v2553_v12 = vld [vmem:[#allocation7 + $0x128] sm:$0xff]  }
  0xbd   : > { %2288 = vmatprep.mubr.bf16.mxu1 %v2994_v13 }
  0xbe   : > { %2223 = vmatpush3.bf16.msra.mxu0 %v2523_v46 }
  0xbf   : > { %2287 = vmatpush3.bf16.msra.mxu1 %v2524_v47  ;;  %2240 = vmatprep.subr.bf16.mxu0 %v2525_v48 }
  0xc0   : > { %2304 = vmatprep.subr.bf16.mxu1 %v2526_v49 }
  0xc1   : > { %2225 = vmatmul.mubr.bf16.vlgmr.msra.gmra.mrb[16].mxu0 %v2999_v18 }
  0xc2   : > { %2289 = vmatmul.mubr.bf16.vlgmr.msra.gmra.mrb[16].mxu1 %v3002_v21  ;;  %2241 = vmatpush3.bf16.msra.mxu0 %v2525_v48 }
  0xc3   : > { %2305 = vmatpush3.bf16.msra.mxu1 %v2526_v49  ;;  %2242 = vmatprep.subr.bf16.mxu0 %v2527_v50 }
  0xc4   : > { %2306 = vmatprep.subr.bf16.mxu1 %v2528_v51  ;;  %2228 = vmatprep.mubr.bf16.mxu0 %v3005_v24 }
  0xc5   : > { %2292 = vmatprep.mubr.bf16.mxu1 %v3009_v25 }
  0xc6   : > { %2243 = vmatpush3.bf16.msra.mxu0 %v2527_v50 }
  0xc7   : > { %2307 = vmatpush3.bf16.msra.mxu1 %v2528_v51  ;;  %2244 = vmatprep.subr.bf16.mxu0 %v2529_v52 }
  0xc8   : > { %2308 = vmatprep.subr.bf16.mxu1 %v2530_v53 }
  0xc9   : > { %2229 = vmatmul.mubr.bf16.gmra.mrb[20].mxu0 %v3013_v26 }
  0xca   : > { %2293 = vmatmul.mubr.bf16.gmra.mrb[20].mxu1 %v3018_v29  ;;  %2245 = vmatpush3.bf16.msra.mxu0 %v2529_v52 }
  0xcb   : > { %2309 = vmatpush3.bf16.msra.mxu1 %v2530_v53  ;;  %2246 = vmatprep.subr.bf16.mxu0 %v2531_v54 }
  0xcc   : > { %2310 = vmatprep.subr.bf16.mxu1 %v2532_v55  ;;  %2232 = vmatprep.mubr.bf16.mxu0 %v3021_v32 }
  0xcd   : > { %2296 = vmatprep.mubr.bf16.mxu1 %v3025_v33 }
  0xce   : > { %2247 = vmatpush3.bf16.msra.mxu0 %v2531_v54 }
  0xcf   : > { %2311 = vmatpush3.bf16.msra.mxu1 %v2532_v55  ;;  %2248 = vmatprep.subr.bf16.mxu0 %v2533_v56 }
  0xd0   : > { %2312 = vmatprep.subr.bf16.mxu1 %v2534_v57 }
  0xd1   : > { %2233 = vmatmul.mubr.bf16.gmra.mrb[24].mxu0 %v3029_v34 }
  0xd2   : > { %2297 = vmatmul.mubr.bf16.gmra.mrb[24].mxu1 %v3034_v37  ;;  %2249 = vmatpush3.bf16.msra.mxu0 %v2533_v56 }
  0xd3   : > { %2313 = vmatpush3.bf16.msra.mxu1 %v2534_v57  ;;  %2250 = vmatprep.subr.bf16.mxu0 %v2535_v58 }
  0xd4   : > { %2314 = vmatprep.subr.bf16.mxu1 %v2536_v59  ;;  %2236 = vmatprep.mubr.bf16.mxu0 %v3037_v40 }
  0xd5   : > { %2300 = vmatprep.mubr.bf16.mxu1 %v3041_v41 }
  0xd6   : > { %2251 = vmatpush3.bf16.msra.mxu0 %v2535_v58 }
  0xd7   : > { %2315 = vmatpush3.bf16.msra.mxu1 %v2536_v59  ;;  %2252 = vmatprep.subr.bf16.mxu0 %v2537_v60 }
  0xd8   : > { %2316 = vmatprep.subr.bf16.mxu1 %v2538_v61 }
  0xd9   : > { %2237 = vmatmul.mubr.bf16.gmra.mrb[28].mxu0 %v3047_v44 }
  0xda   : > { %2301 = vmatmul.mubr.bf16.gmra.mrb[28].mxu1 %v3050_v45  ;;  %2253 = vmatpush3.bf16.msra.mxu0 %v2537_v60 }
  0xdb   : > { %2317 = vmatpush3.bf16.msra.mxu1 %v2538_v61  ;;  %2254 = vmatprep.subr.bf16.mxu0 %v2539_v62 }
  0xdc   : > { %2318 = vmatprep.subr.bf16.mxu1 %v2540_v63  ;;  %2256 = vmatprep.mubr.bf16.mxu0 %v2994_v13 }
  0xdd   : > { %2320 = vmatprep.mubr.bf16.mxu1 %v2994_v13  ;;  %v2552_v13 = vld [vmem:[#allocation7 + $0x170] sm:$0xff]  }
  0xde   : > { %2255 = vmatpush3.bf16.msra.mxu0 %v2539_v62 }
  0xdf   : > { %2319 = vmatpush3.bf16.msra.mxu1 %v2540_v63  ;;  %2336 = vmatprep.subr.bf16.mxu0 %v2744_v1 }
  0xe0   : > { %2356 = vmatprep.subr.bf16.mxu1 %v2744_v1 }
  0xe1   : > { %2257 = vmatmul.mubr.bf16.vlgmr.msra.gmra.mrb[16].mxu0 %v3002_v21 }
  0xe2   : > { %2321 = vmatmul.mubr.bf16.vlgmr.msra.gmra.mrb[32].mxu1 %v3002_v21  ;;  %2260 = vmatprep.mubr.bf16.mxu0 %v3009_v25 }
  0xe3   : > { %2357 = vmatpush3.bf16.msra.mxu1 %v2541_v0  ;;  %2324 = vmatprep.mubr.bf16.mxu1 %v3009_v25 }
  0xe4   : > { %2358 = vmatprep.subr.bf16.mxu1 %v2744_v1  ;;  %2337 = vmatpush3.bf16.msra.mxu0 %v2543_v2 }
  0xe5   : > { %2338 = vmatprep.subr.bf16.mxu0 %v2744_v1 }
  0xe7   : > { %2359 = vmatpush3.bf16.msra.mxu1 %v2542_v3 }
  0xe8   : > { %2360 = vmatprep.subr.bf16.mxu1 %v2744_v1  ;;  %2339 = vmatpush3.bf16.msra.mxu0 %v2545_v4 }
  0xe9   : > { %2261 = vmatmul.mubr.bf16.gmra.mrb[20].mxu0 %v3018_v29  ;;  %2340 = vmatprep.subr.bf16.mxu0 %v2744_v1 }
  0xea   : > { %2325 = vmatmul.mubr.bf16.gmra.mrb[36].mxu1 %v3018_v29  ;;  %2264 = vmatprep.mubr.bf16.mxu0 %v3025_v33 }
  0xeb   : > { %2361 = vmatpush3.bf16.msra.mxu1 %v2544_v5  ;;  %2328 = vmatprep.mubr.bf16.mxu1 %v3025_v33 }
  0xec   : > { %2362 = vmatprep.subr.bf16.mxu1 %v2744_v1  ;;  %2341 = vmatpush3.bf16.msra.mxu0 %v2547_v6 }
  0xed   : > { %2342 = vmatprep.subr.bf16.mxu0 %v2744_v1 }
  0xef   : > { %2363 = vmatpush3.bf16.msra.mxu1 %v2546_v7 }
  0xf0   : > { %2364 = vmatprep.subr.bf16.mxu1 %v2744_v1  ;;  %2343 = vmatpush3.bf16.msra.mxu0 %v2549_v8 }
  0xf1   : > { %2265 = vmatmul.mubr.bf16.gmra.mrb[24].mxu0 %v3034_v37  ;;  %2344 = vmatprep.subr.bf16.mxu0 %v2744_v1 }
  0xf2   : > { %2329 = vmatmul.mubr.bf16.gmra.mrb[40].mxu1 %v3034_v37  ;;  %2268 = vmatprep.mubr.bf16.mxu0 %v3041_v41 }
  0xf3   : > { %2365 = vmatpush3.bf16.msra.mxu1 %v2548_v9  ;;  %2332 = vmatprep.mubr.bf16.mxu1 %v3041_v41 }
  0xf4   : > { %2366 = vmatprep.subr.bf16.mxu1 %v2744_v1  ;;  %2345 = vmatpush3.bf16.msra.mxu0 %v2551_v10 }
  0xf5   : > { %2346 = vmatprep.subr.bf16.mxu0 %v2744_v1 }
  0xf7   : > { %2367 = vmatpush3.bf16.msra.mxu1 %v2550_v11 }
  0xf8   : > { %2368 = vmatprep.subr.bf16.mxu1 %v2744_v1  ;;  %2347 = vmatpush3.bf16.msra.mxu0 %v2553_v12 }
  0xf9   : > { %2269 = vmatmul.mubr.bf16.gmra.mrb[28].mxu0 %v3050_v45  ;;  %2348 = vmatprep.subr.bf16.mxu0 %v2744_v1 }
  0xfa   : > { %2333 = vmatmul.mubr.bf16.gmra.mrb[44].mxu1 %v3050_v45  ;;  %2352 = vmatprep.mubr.msk.bf16.mxu0 %vm2745_vm0, %v2744_v1 }
  0xfb   : > { %2369 = vmatpush3.bf16.msra.mxu1 %v2552_v13  ;;  %2372 = vmatprep.mubr.msk.bf16.mxu1 %vm2745_vm0, %v2744_v1 }
  0xfc   : > { %2370 = vmatprep.subr.bf16.mxu1 %v2744_v1  ;;  %2349 = vmatpush3.bf16.msra.mxu0 %v2555_v14 }
  0xfd   : > { %2350 = vmatprep.subr.bf16.mxu0 %v2744_v1 }
  0xff   : > { %2371 = vmatpush3.bf16.msra.mxu1 %v2554_v15 }
 0x100   : > { %2351 = vmatpush3.bf16.msra.mxu0 %v2557_v16 }
 0x102   : > { %2373 = vmatmul.mubr.bf16.vlgmr.msra.gmra.mrb[48].mxu1 %v2556_v17 }
 0x103   : > { %2353 = vmatmul.mubr.bf16.vlgmr.msra.gmra.mrb[32].mxu0 %v2556_v17 }
 0x174   : > { %v2162_v18 = vpop.f32.mrb[0].mxu0 }
 0x175   : > { %v2194_v19 = vpop.f32.mrb[0].mxu1  ;;  %v517_v20 = vpop.f32.mrb[1].mxu0 }
 0x176   : > { %v3087_v21 = vadd.f32 %v2194_v19, %v2162_v18  ;;  %v702_v22 = vpop.f32.mrb[1].mxu1  ;;  %v2163_v23 = vpop.f32.mrb[2].mxu0 }
 0x177   : > { %v3089_v24 = vadd.f32 %v702_v22, %v517_v20  ;;  %v520_v25 = vpop.f32.mrb[3].mxu0  ;;  %v2195_v26 = vpop.f32.mrb[2].mxu1 }
 0x178   : > { %v705_v27 = vpop.f32.mrb[3].mxu1 }
 0x17c   : > { %v2166_v28 = vpop.f32.mrb[4].mxu0 }
 0x17d   : > { %v2198_v29 = vpop.f32.mrb[4].mxu1  ;;  %v531_v30 = vpop.f32.mrb[5].mxu0 }
 0x17e   : > { %v3091_v31 = vadd.f32 %v2198_v29, %v2166_v28  ;;  %v716_v32 = vpop.f32.mrb[5].mxu1  ;;  %v2167_v33 = vpop.f32.mrb[6].mxu0  ;;  %v3116_v28 = vld [vmem:[%s3222_s3] ss:$0 sm:$0xff] }
 0x17f   : > { %v3093_v34 = vadd.f32 %v716_v32, %v531_v30  ;;  %v534_v35 = vpop.f32.mrb[7].mxu0  ;;  %v2199_v36 = vpop.f32.mrb[6].mxu1 }
 0x180   : > { %v719_v37 = vpop.f32.mrb[7].mxu1 }
 0x184   : > { %v2170_v38 = vpop.f32.mrb[8].mxu0 }
 0x185   : > { %v2202_v39 = vpop.f32.mrb[8].mxu1  ;;  %v545_v40 = vpop.f32.mrb[9].mxu0 }
 0x186   : > { %v3095_v41 = vadd.f32 %v2202_v39, %v2170_v38  ;;  %v730_v42 = vpop.f32.mrb[9].mxu1  ;;  %v2171_v43 = vpop.f32.mrb[10].mxu0 }
 0x187   : > { %v3097_v44 = vadd.f32 %v730_v42, %v545_v40  ;;  %v548_v45 = vpop.f32.mrb[11].mxu0  ;;  %v2203_v46 = vpop.f32.mrb[10].mxu1 }
 0x188   : > { %v733_v47 = vpop.f32.mrb[11].mxu1 }
 0x18c   : > { %v2174_v48 = vpop.f32.mrb[12].mxu0 }
 0x18d   : > { %v2206_v49 = vpop.f32.mrb[12].mxu1  ;;  %v559_v50 = vpop.f32.mrb[13].mxu0 }
 0x18e   : > { %v3099_v51 = vadd.f32 %v2206_v49, %v2174_v48  ;;  %v744_v52 = vpop.f32.mrb[13].mxu1  ;;  %v2175_v53 = vpop.f32.mrb[14].mxu0 }
 0x18f   : > { %v3101_v54 = vadd.f32 %v744_v52, %v559_v50  ;;  %v562_v55 = vpop.f32.mrb[15].mxu0  ;;  %v2207_v56 = vpop.f32.mrb[14].mxu1 }
 0x190   : > { %v747_v57 = vpop.f32.mrb[15].mxu1 }
 0x195   : > { %v2290_v58 = vpop.f32.mrb[16].mxu1 }
 0x196   : > { %v1260_v59 = vpop.f32.mrb[17].mxu1 }
 0x197   : > { %v2291_v60 = vpop.f32.mrb[18].mxu1 }
 0x198   : > { %v1262_v61 = vpop.f32.mrb[19].mxu1 }
 0x19d   : > { %v2294_v62 = vpop.f32.mrb[20].mxu1 }
 0x19e   : > { %v1273_v63 = vpop.f32.mrb[21].mxu1 }
 0x19f   : > { %v2295_v0 = vpop.f32.mrb[22].mxu1 }
 0x1a0   : > { %v1276_v1 = vpop.f32.mrb[23].mxu1 }
 0x1a5   : > { %v3103_v2 = vpop.f32.mrb[24].mxu1 }
 0x1a6   : > { %v3105_v3 = vpop.f32.mrb[25].mxu1 }
 0x1a7   : > { %v2299_v4 = vpop.f32.mrb[26].mxu1 }
 0x1a8   : > { %v1290_v5 = vpop.f32.mrb[27].mxu1 }
 0x1ad   : > { %v3107_v6 = vpop.f32.mrb[28].mxu1 }
 0x1ae   : > { %v3109_v7 = vpop.f32.mrb[29].mxu1 }
 0x1af   : > { %v2303_v8 = vpop.f32.mrb[30].mxu1 }
 0x1b0   : > { %v1304_v9 = vpop.f32.mrb[31].mxu1 }
 0x1b4   : > { %v2258_v10 = vpop.f32.mrb[16].mxu0 }
 0x1b5   : > { %v2322_v11 = vpop.f32.mrb[32].mxu1  ;;  %v1018_v12 = vpop.f32.mrb[17].mxu0  ;;  %v1101_v15 = vrot.slane %v2258_v10, 1 }
 0x1b6   : > { %v1413_v13 = vpop.f32.mrb[33].mxu1  ;;  %v2259_v14 = vpop.f32.mrb[18].mxu0  ;;  %v1488_v19 = vrot.slane %v2322_v11, 1  ;;  %v1098_v20 = vrot.slane %v1018_v12, 1 }
 0x1b7   : > { %v1102_v16 = vrot.slane %v2259_v14, 1  ;;  %v2323_v17 = vpop.f32.mrb[34].mxu1  ;;  %v1021_v18 = vpop.f32.mrb[19].mxu0 }
 0x1b8   : > { %v1489_v22 = vrot.slane %v2323_v17, 1  ;;  %v1099_v23 = vrot.slane %v1021_v18, 1  ;;  %v1415_v25 = vpop.f32.mrb[35].mxu1 }
 0x1b9   : > { %v1103_v26 = vsel %vm1097_vm1, %v1101_v15, %v1102_v16 }
 0x1ba   : > { %v1131_v27 = vadd.f32 %v1103_v26, %v3087_v21  ;;  %v1490_v29 = vsel %vm1097_vm1, %v1488_v19, %v1489_v22  ;;  %v1100_v30 = vsel %vm1097_vm1, %v1098_v20, %v1099_v23 }
 0x1bb   : > { %v1516_v32 = vadd.f32 %v2290_v58, %v1490_v29  ;;  %v1130_v33 = vadd.f32 %v1100_v30, %v3089_v24 }
 0x1bc   : > { %v2262_v35 = vpop.f32.mrb[20].mxu0  ;;  %v1146_v0 = vadd.f32 %v3116_v28, %v1131_v27 }
 0x1bd   : > { %v1145_v36 = vadd.f32 %v3116_v28, %v1130_v33  ;;  %v2326_v37 = vpop.f32.mrb[36].mxu1  ;;  %v1034_v38 = vpop.f32.mrb[21].mxu0  ;;  %v1107_v42 = vrot.slane %v2262_v35, 1 }
 0x1be   : > { %v1427_v39 = vpop.f32.mrb[37].mxu1  ;;  %v2263_v21 = vpop.f32.mrb[22].mxu0  ;;  %v1494_v47 = vrot.slane %v2326_v37, 1  ;;  %v1104_v48 = vrot.slane %v1034_v38, 1 }
 0x1bf   : > { %v1530_v40 = vadd.f32 %v1516_v32, %v1145_v36  ;;  %v1108_v43 = vrot.slane %v2263_v21, 1  ;;  %v2327_v45 = vpop.f32.mrb[38].mxu1  ;;  %v1037_v46 = vpop.f32.mrb[23].mxu0  ;;  %v1491_v24 = vrot.slane %v1427_v39, 1 }
 0x1c0   : > { %v1495_v49 = vrot.slane %v2327_v45, 1  ;;  %v1105_v50 = vrot.slane %v1037_v46, 1  ;;  %v1430_v52 = vpop.f32.mrb[39].mxu1 }
 0x1c1   : > { %1537 = vst [vmem:[%s3123_s7] sm:$0xff] %v1530_v40  ;;  %v1109_v53 = vsel %vm1097_vm1, %v1107_v42, %v1108_v43  ;;  %v1492_v55 = vrot.slane %v1430_v52, 1 }
 0x1c2   : > { %v1133_v56 = vadd.f32 %v1109_v53, %v3091_v31  ;;  %v1496_v57 = vsel %vm1097_vm1, %v1494_v47, %v1495_v49  ;;  %v1106_v58 = vsel %vm1097_vm1, %v1104_v48, %v1105_v50 }
 0x1c3   : > { %v1518_v59 = vadd.f32 %v2294_v62, %v1496_v57  ;;  %v1132_v60 = vadd.f32 %v1106_v58, %v3093_v34  ;;  %v1493_v61 = vsel %vm1097_vm1, %v1491_v24, %v1492_v55 }
 0x1c4   : > { %v1517_v1 = vadd.f32 %v1493_v61, %v1273_v63  ;;  %v2266_v4 = vpop.f32.mrb[24].mxu0  ;;  %v1148_v32 = vadd.f32 %v3116_v28, %v1133_v56 }
 0x1c5   : > { %v1147_v5 = vadd.f32 %v3116_v28, %v1132_v60  ;;  %v2330_v8 = vpop.f32.mrb[40].mxu1  ;;  %v1050_v9 = vpop.f32.mrb[25].mxu0  ;;  %v1113_v13 = vrot.slane %v2266_v4, 1 }
 0x1c6   : > { %v1531_v31 = vadd.f32 %v1517_v1, %v1146_v0  ;;  %v1443_v10 = vpop.f32.mrb[41].mxu1  ;;  %v2267_v11 = vpop.f32.mrb[26].mxu0  ;;  %v1500_v15 = vrot.slane %v2330_v8, 1  ;;  %v1110_v16 = vrot.slane %v1050_v9, 1 }
 0x1c7   : > { %v1532_v12 = vadd.f32 %v1518_v59, %v1147_v5  ;;  %v1114_v62 = vrot.slane %v2267_v11, 1  ;;  %v2331_v14 = vpop.f32.mrb[42].mxu1  ;;  %v1053_v34 = vpop.f32.mrb[27].mxu0  ;;  %v1497_v19 = vrot.slane %v1443_v10, 1 }
 0x1c8   : > { %1538 = vst [vmem:[%s3123_s7 + $0x8] sm:$0xff] %v1531_v31  ;;  %v1501_v17 = vrot.slane %v2331_v14, 1  ;;  %v1111_v18 = vrot.slane %v1053_v34, 1  ;;  %v1446_v63 = vpop.f32.mrb[43].mxu1 }
 0x1c9   : > { %1539 = vst [vmem:[%s3123_s7 + $0x10] sm:$0xff] %v1532_v12  ;;  %v1115_v20 = vsel %vm1097_vm1, %v1113_v13, %v1114_v62  ;;  %v1498_v22 = vrot.slane %v1446_v63, 1 }
 0x1ca   : > { %v1135_v23 = vadd.f32 %v1115_v20, %v3095_v41  ;;  %v1502_v25 = vsel %vm1097_vm1, %v1500_v15, %v1501_v17  ;;  %v1112_v26 = vsel %vm1097_vm1, %v1110_v16, %v1111_v18 }
 0x1cb   : > { %v1520_v27 = vadd.f32 %v3103_v2, %v1502_v25  ;;  %v1134_v29 = vadd.f32 %v1112_v26, %v3097_v44  ;;  %v1499_v30 = vsel %vm1097_vm1, %v1497_v19, %v1498_v22 }
 0x1cc   : > { %v1519_v33 = vadd.f32 %v1499_v30, %v3105_v3  ;;  %v2270_v35 = vpop.f32.mrb[28].mxu0  ;;  %v1150_v59 = vadd.f32 %v3116_v28, %v1135_v23 }
 0x1cd   : > { %v1149_v36 = vadd.f32 %v3116_v28, %v1134_v29  ;;  %v2334_v37 = vpop.f32.mrb[44].mxu1  ;;  %v1066_v41 = vpop.f32.mrb[29].mxu0  ;;  %v1119_v2 = vrot.slane %v2270_v35, 1 }
 0x1ce   : > { %v1533_v38 = vadd.f32 %v1519_v33, %v1148_v32  ;;  %v1459_v39 = vpop.f32.mrb[45].mxu1  ;;  %v2271_v21 = vpop.f32.mrb[30].mxu0  ;;  %v1506_v45 = vrot.slane %v2334_v37, 1  ;;  %v1116_v46 = vrot.slane %v1066_v41, 1 }
 0x1cf   : > { %v1534_v40 = vadd.f32 %v1520_v27, %v1149_v36  ;;  %v1120_v42 = vrot.slane %v2271_v21, 1  ;;  %v2335_v44 = vpop.f32.mrb[46].mxu1  ;;  %v1069_v43 = vpop.f32.mrb[31].mxu0  ;;  %v1503_v49 = vrot.slane %v1459_v39, 1 }
 0x1d0   : > { %1540 = vst [vmem:[%s3123_s7 + $0x18] sm:$0xff] %v1533_v38  ;;  %v1507_v47 = vrot.slane %v2335_v44, 1  ;;  %v1117_v48 = vrot.slane %v1069_v43, 1  ;;  %v1462_v3 = vpop.f32.mrb[47].mxu1 }
 0x1d1   : > { %1541 = vst [vmem:[%s3123_s7 + $0x20] sm:$0xff] %v1534_v40  ;;  %v1121_v50 = vsel %vm1097_vm1, %v1119_v2, %v1120_v42  ;;  %v1504_v52 = vrot.slane %v1462_v3, 1 }
 0x1d2   : > { %v1137_v24 = vadd.f32 %v1121_v50, %v3099_v51  ;;  %v1508_v53 = vsel %vm1097_vm1, %v1506_v45, %v1507_v47  ;;  %v1118_v55 = vsel %vm1097_vm1, %v1116_v46, %v1117_v48 }
 0x1d3   : > { %v1522_v56 = vadd.f32 %v3107_v6, %v1508_v53  ;;  %v1136_v57 = vadd.f32 %v1118_v55, %v3101_v54  ;;  %v1505_v58 = vsel %vm1097_vm1, %v1503_v49, %v1504_v52 }
 0x1d4   : > { %v1521_v60 = vadd.f32 %v1505_v58, %v3109_v7  ;;  %v1152_v12 = vadd.f32 %v3116_v28, %v1137_v24 }
 0x1d5   : > { %v1151_v61 = vadd.f32 %v3116_v28, %v1136_v57  ;;  %v1752_v51 = vpop.f32.mrb[48].mxu1 }
 0x1d6   : > { %v1535_v0 = vadd.f32 %v1521_v60, %v1150_v59  ;;  %v2374_v1 = vpop.f32.mrb[49].mxu1  ;;  %v1648_v4 = vpop.f32.mrb[32].mxu0  ;;  %v1761_v54 = vrot.slane %v1752_v51, 1 }
 0x1d7   : > { %v1536_v5 = vadd.f32 %v1522_v56, %v1151_v61  ;;  %v1755_v8 = vpop.f32.mrb[50].mxu1  ;;  %v2354_v6 = vpop.f32.mrb[33].mxu0 }
 0x1d8   : > { %1542 = vst [vmem:[%s3123_s7 + $0x28] sm:$0xff] %v1535_v0  ;;  %v1762_v9 = vrot.slane %v1755_v8, 1  ;;  %v2375_v31 = vpop.f32.mrb[51].mxu1  ;;  %v1651_v10 = vpop.f32.mrb[34].mxu0 }
 0x1d9   : > { %1543 = vst [vmem:[%s3123_s7 + $0x30] sm:$0xff] %v1536_v5  ;;  %v2355_v7 = vpop.f32.mrb[35].mxu0 }
 0x1da   : > { %v1763_v11 = vsel %vm1097_vm1, %v1761_v54, %v1762_v9 }
 0x1db   : > { %v1765_v13 = vadd.f32 %v1763_v11, %v1648_v4 }
 0x1dd   : > { %v1768_v62 = vadd.f32 %v1765_v13, %v1152_v12 }
 0x1df   : > { %2023 = vst [vmem:[%s3123_s7 + $0x38] sm:$0xff] %v1768_v62 }
 0x1e0   : > { %2660 = shalt.err (!%p2657_p8)
}
 0x1e1   : > { %s2661_s8 = scalar_lea.hbm %s3167_s14, 1024  ;;  %s2665_s2 = scalar_lea.hbm %s3223_s4, 2048 }
 0x1e2   : > { %p2662_p12 = scmp.ne.s32.totalorder %s3167_s14, %s2661_s8  ;;  %p2666_p6 = scmp.lt.u32.totalorder %s3167_s14, %s3223_s4 }
 0x1e3   : > { %p2667_p11 = scmp.lt.u32.totalorder %s2665_s2, %s2661_s8  ;;  %p2669_p5 = scmp.lt.u32.totalorder %s2661_s8, %s3167_s14 }
 0x1e4   : > { %p2663_p13 = pnand %p2662_p12, %p2865_p10 }
 0x1e5   : > { %p2668_p0 = por %p2667_p11, %p2666_p6 }
 0x1e6   : > { %p2664_p3 = pneg %p2663_p13 }
 0x1e7   : > { %p2670_p9 = por %p2669_p5, %p2668_p0 }
 0x1e9   : > { %p2671_p1 = pnand %p2670_p9, %p2664_p3 }
 0x1eb   : > { %2674 = shalt.err (!%p2671_p1)
}
 0x1ec   : > { %s2747_s6 = smov 128   ;;  %s2748_s21 = smov 8  }
 0x1ed   : > { %2401 = dma.vmem_to_hbm [thread:$0]  (%p2865_p10), %s3169_s9, 1024, %s3167_s14, %s1771_s0, %s2747_s6, %s2747_s6, %s2748_s21  }
 0x1ee PF: > { %s1801_s23 = sand.u32 1, %s2717_s15   ;;  %p3253_p2 = scmp.ne.s32.totalorder %s3236_s24, 0 }
 0x1ef   : > { %p3254_p7 = scmp.ge.s32.totalorder %s2737_s20, 2  ;;  %s1802_s10 = scalar_lea.sflag [#allocation4], %s1801_s23 }
 0x1f1   : > { %p2415_p4 = pnand %p3254_p7, %p3253_p2 }
 0x1f3   : > { %2712 = dma.done.wait (!%p2415_p4), %s1802_s10, 1024  }
 0x1f4   : > { %2714 = vsyncadd (!%p2415_p4), %s1802_s10, 4294966272  ;;  %s23_s20 = sadd.s32 1, %s2737_s20   ;;  %s3255_s7 = sld [smem:[#allocation13_spill]] }
 0x1f5   : > { %p20_p8 = scmp.ge.s32.totalorder %s23_s20, 4   ;;  %s3256_s17 = sld [smem:[#allocation15_spill]] }
 0x1f6   : > { %s3257_s28 = sld [smem:[#allocation14_spill]]  ;;  %s3258_s15 = smov %s2721_s16 }
 0x1f7   : > { %s3260_s18 = smov %s2733_s19  ;;  %22 = sbr.rel (!%p20_p8) target bundleno = 11 (0xb), region = 105 }
 0x1fa   : > { %s3259_s16 = smov %s3255_s7 }
 0x1fc   : > { %s3261_s19 = smov %s3257_s28 }
 0x1fe   :  { %1807 = vsyncpa [#allocation3], 1 }
 0x1ff   :  { %1809 = vsyncpa [#allocation3 + $0x1], 1 }
 0x200   :  { %1810 = vsyncpa [#allocation6], 1 }
 0x201   :  { %1812 = vsyncpa [#allocation6 + $0x1], 1 }
 0x202   :  { %1813 = vsyncpa [#allocation4], 1 }
 0x203   :  { %1815 = vsyncpa [#allocation4 + $0x1], 1 }

</bundles_post_ra>
